<compile_context>
chip_gen: v6e
topology: v6e:2x2x1
jax: 0.10.0
libtpu: 0.0.40
codegen_flags: <defaults>
</compile_context>

<pallas_src>
import functools
import math

import jax
import jax.numpy as jnp
from jax.experimental import pallas as pl
from jax.experimental.pallas import tpu as pltpu

_EPS = 1e-8  # torch.nn.functional.cosine_similarity default eps


def _round_up(x, m):
    return ((x + m - 1) // m) * m


def _vmem_capacity_bytes():
    """Physical VMEM of the local TPU; conservative fallback if unqueryable."""
    try:
        info = pltpu.get_tpu_info()
        for name in ("vmem_capacity_bytes", "vmem_size_bytes", "vmem_bytes"):
            val = getattr(info, name, None)
            if val:
                return int(val)
    except Exception:
        pass
    return 64 * 1024 * 1024  # v7x per-TensorCore physical VMEM (smallest of v5e/v6e/v7x)


def _ppi_kernel(a_ref, b_ref, w_ref, bias_ref, o_ref, *, matmul_dtype, packed_out):
    # Cast to the MXU input dtype in VMEM: no extra HBM traffic for f32 callers,
    # no-op for callers that already pass bf16/fp8 activations.
    a = a_ref[...].astype(matmul_dtype)
    b = b_ref[...].astype(matmul_dtype)
    w = w_ref[...]
    bias = bias_ref[...]                                   # (1, H_pad) f32

    # Fused Linear + ReLU for both protein batches against the resident,
    # single-buffered weight.  f32 accumulation on the MXU.
    h_a = jnp.maximum(jnp.dot(a, w, preferred_element_type=jnp.float32) + bias, 0.0)
    h_b = jnp.maximum(jnp.dot(b, w, preferred_element_type=jnp.float32) + bias, 0.0)

    # Row-wise cosine similarity (lane-axis reductions).  Zero-padded hidden
    # columns contribute exactly 0 to every sum.
    dot = jnp.sum(h_a * h_b, axis=-1, keepdims=True)      # (T, 1)
    sa = jnp.sum(h_a * h_a, axis=-1, keepdims=True)
    sb = jnp.sum(h_b * h_b, axis=-1, keepdims=True)

    # torch: dot / (max(||a||, eps) * max(||b||, eps)).  Clamp each side
    # separately and use two EUP rsqrts so sa*sb cannot overflow f32.
    eps2 = _EPS * _EPS
    inv = jax.lax.rsqrt(jnp.maximum(sa, eps2)) * jax.lax.rsqrt(jnp.maximum(sb, eps2))
    cos = dot * inv                                        # (T, 1) f32

    if packed_out:
        # Lane-pack the per-row cosines into a (1, T) row (small XLU relayout)
        # so the output store is lane-dense and writeback is 4 B per pair.
        o_ref[...] = jnp.transpose(cos)
    else:
        # Portable fallback: (T, 1) column block (same HBM bytes, masked vst).
        o_ref[...] = cos


@functools.partial(jax.jit, static_argnames=("tile_n", "matmul_dtype", "fast_path"))
def _ppi_forward(protein_a, protein_b, weight, bias, *, tile_n, matmul_dtype, fast_path):
    n, d = protein_a.shape
    h = weight.shape[0]
    h_pad = _round_up(h, 128)

    in_itemsize = jnp.dtype(protein_a.dtype).itemsize
    w_itemsize = jnp.dtype(matmul_dtype).itemsize
    vmem_cap = _vmem_capacity_bytes()

    if tile_n is None:
        # VMEM budget: double-buffered A/B input blocks (at their HBM dtype),
        # double-buffered output row, the f32 hidden tiles h_a/h_b (+ one temp),
        # and the resident weight/bias, with headroom for compiler scratch.
        vmem_budget = int(0.75 * vmem_cap)
        fixed = 2 * d * h_pad * w_itemsize + 2 * h_pad * 4 + (1 << 20)
        per_row = 2 * 2 * d * in_itemsize + 2 * 4 + 3 * h_pad * 4
        tile_n = max(128, min(2048, (vmem_budget - fixed) // per_row))
        # Keep >=4 grid steps when the batch allows so the "parallel" batch axis
        # can span both v7x TensorCores (and the DMA pipeline has some depth).
        tile_n = min(tile_n, max(128, _round_up(-(-n // 4), 128)))
        tile_n = max(128, (tile_n // 128) * 128)
    else:
        tile_n = max(8, _round_up(int(tile_n), 8))
    if tile_n >= n:
        tile_n = n              # single full-batch block; no padding anywhere
    grid = pl.cdiv(n, tile_n)   # ragged tail handled by the pipeline (rows >= n discarded)
    n_alloc = grid * tile_n

    # Parameters: pad only H to the lane width (one-time, parameter-sized copies).
    w_t = jnp.pad(weight.T, ((0, 0), (0, h_pad - h))).astype(matmul_dtype)
    bias2d = jnp.pad(bias, (0, h_pad - h)).astype(jnp.float32).reshape(1, h_pad)

    if fast_path:
        w_spec = pl.BlockSpec((d, h_pad), lambda i: (0, 0), pipeline_mode=pl.Buffered(1))
        b_spec = pl.BlockSpec((1, h_pad), lambda i: (0, 0), pipeline_mode=pl.Buffered(1))
        out_shape = jax.ShapeDtypeStruct((grid, tile_n), jnp.float32)
        out_spec = pl.BlockSpec((1, tile_n), lambda i: (i, 0))
    else:
        # Conservative variant: default double-buffered params, column output.
        w_spec = pl.BlockSpec((d, h_pad), lambda i: (0, 0))
        b_spec = pl.BlockSpec((1, h_pad), lambda i: (0, 0))
        out_shape = jax.ShapeDtypeStruct((n_alloc, 1), jnp.float32)
        out_spec = pl.BlockSpec((tile_n, 1), lambda i: (i, 0))

    cost = pl.CostEstimate(
        flops=4 * n * d * h_pad + 8 * n * h_pad,
        transcendentals=2 * n,
        bytes_accessed=(2 * n * d * in_itemsize            # A + B reads
                        + d * h_pad * w_itemsize + h_pad * 4   # params
                        + n_alloc * 4),                     # packed output
    )

    kernel = functools.partial(_ppi_kernel, matmul_dtype=matmul_dtype, packed_out=fast_path)

    out = pl.pallas_call(
        kernel,
        out_shape=out_shape,
        grid=(grid,),
        in_specs=[
            # Batch-tiled activations; last-dim block = full (unpadded) D.
            pl.BlockSpec((tile_n, d), lambda i: (i, 0)),
            pl.BlockSpec((tile_n, d), lambda i: (i, 0)),
            w_spec,
            b_spec,
        ],
        out_specs=out_spec,
        compiler_params=pltpu.CompilerParams(
            dimension_semantics=("parallel",),      # shard batch tiles across TCs (v7x)
            vmem_limit_bytes=int(0.9 * vmem_cap),
        ),
        cost_estimate=cost,
    )(protein_a, protein_b, w_t, bias2d)

    return out.reshape(-1)[:n]


_FAST_PATH_OK = True  # flipped off if the optimized variant fails to lower locally


def ppi_classifier_forward(protein_a, protein_b, weight, bias, *,
                           tile_n=None, matmul_dtype=jnp.bfloat16):
    """PPIClassifier.forward.  protein_a/b: (N, D); weight: (H, D); bias: (H,) -> (N,).

    matmul_dtype controls the MXU input dtype (bfloat16 default; jnp.float32 for
    numerically faithful PyTorch math; jnp.float8_e4m3fn on v7x where accuracy
    allows).  Accumulation and the cosine epilogue are always f32.  For the full
    HBM-bandwidth win, pass activations that are already bfloat16.
    """
    global _FAST_PATH_OK
    if _FAST_PATH_OK:
        try:
            return _ppi_forward(protein_a, protein_b, weight, bias,
                                tile_n=tile_n, matmul_dtype=matmul_dtype, fast_path=True)
        except Exception:
            # Portability fallback (same math, same HBM bytes): some Mosaic
            # builds may reject the (T,1)->(1,T) lane-pack or Buffered(1).
            _FAST_PATH_OK = False
    return _ppi_forward(protein_a, protein_b, weight, bias,
                        tile_n=tile_n, matmul_dtype=matmul_dtype, fast_path=False)


def init_params(key, input_dim, hidden_dim):
    """Deterministic init matching nn.Linear + xavier_uniform_ on the weight."""
    k_w, k_b = jax.random.split(key)
    a = math.sqrt(6.0 / (input_dim + hidden_dim))           # xavier_uniform_
    weight = jax.random.uniform(k_w, (hidden_dim, input_dim), jnp.float32,
                                minval=-a, maxval=a)
    bound = 1.0 / math.sqrt(input_dim)                       # nn.Linear bias default
    bias = jax.random.uniform(k_b, (hidden_dim,), jnp.float32,
                              minval=-bound, maxval=bound)
    return weight, bias


if __name__ == "__main__":
    N, D, H = 8, 32, 32  # batch pairs, input_dimension, hidden_dimension

    key = jax.random.PRNGKey(0)
    k_a, k_b, k_p = jax.random.split(key, 3)
    protein_a = jax.random.normal(k_a, (N, D), jnp.float32)
    protein_b = jax.random.normal(k_b, (N, D), jnp.float32)
    weight, bias = init_params(k_p, D, H)

    # Plain-JAX reference (mirrors the PyTorch forward, incl. per-norm eps clamp).
    h_all = jnp.maximum(
        jnp.concatenate([protein_a, protein_b], 0) @ weight.T + bias, 0.0)
    ha, hb = h_all[:N], h_all[N:]
    na = jnp.maximum(jnp.linalg.norm(ha, axis=-1), _EPS)
    nb = jnp.maximum(jnp.linalg.norm(hb, axis=-1), _EPS)
    ref = jnp.sum(ha * hb, -1) / (na * nb)

    # Default path: bf16 MXU inputs, f32 accumulation + epilogue.
    cos_bf16 = ppi_classifier_forward(protein_a, protein_b, weight, bias)
    jax.block_until_ready(cos_bf16)
    assert cos_bf16.shape == (N,)
    assert jnp.allclose(cos_bf16, ref, atol=5e-2), (cos_bf16, ref)

    # f32 path: numerically faithful to the PyTorch module.
    cos_f32 = ppi_classifier_forward(protein_a, protein_b, weight, bias,
                                     matmul_dtype=jnp.float32)
    jax.block_until_ready(cos_f32)
    assert jnp.allclose(cos_f32, ref, atol=1e-4), (cos_f32, ref)

    print("KERNEL_OK")
</pallas_src>

<mosaic_0001>
module attributes {stable_mosaic.version = 11 : i64} {
  func.func @_ppi_kernel(%arg0: i32, %arg1: memref<8x32xf32, #tpu.memory_space<vmem>>, %arg2: memref<8x32xf32, #tpu.memory_space<vmem>>, %arg3: memref<32x128xbf16, #tpu.memory_space<vmem>>, %arg4: memref<1x128xf32, #tpu.memory_space<vmem>>, %arg5: memref<1x8xf32, #tpu.memory_space<vmem>>) attributes {dimension_semantics = [#tpu.dimension_semantics<parallel>], iteration_bounds = array<i64: 1>, scalar_prefetch = 0 : i64, scratch_operands = 0 : i64, tpu.core_type = #tpu.core_type<tc>, window_params = [{transform_indices = @transform_0, window_bounds = array<i64: 8, 32>}, {transform_indices = @transform_1, window_bounds = array<i64: 8, 32>}, {pipeline_mode = #tpu.pipeline_mode<synchronous>, transform_indices = @transform_2, window_bounds = array<i64: 32, 128>}, {pipeline_mode = #tpu.pipeline_mode<synchronous>, transform_indices = @transform_3, window_bounds = array<i64: 1, 128>}, {transform_indices = @transform_4, window_bounds = array<i64: 1, 8>}]} {
    %c0 = arith.constant 0 : index
    %c0_0 = arith.constant 0 : index
    %0 = vector.load %arg1[%c0, %c0_0] : memref<8x32xf32, #tpu.memory_space<vmem>>, vector<8x32xf32>
    %1 = arith.truncf %0 : vector<8x32xf32> to vector<8x32xbf16>
    %c0_1 = arith.constant 0 : index
    %c0_2 = arith.constant 0 : index
    %2 = vector.load %arg2[%c0_1, %c0_2] : memref<8x32xf32, #tpu.memory_space<vmem>>, vector<8x32xf32>
    %3 = arith.truncf %2 : vector<8x32xf32> to vector<8x32xbf16>
    %c0_3 = arith.constant 0 : index
    %c0_4 = arith.constant 0 : index
    %4 = vector.load %arg3[%c0_3, %c0_4] : memref<32x128xbf16, #tpu.memory_space<vmem>>, vector<32x128xbf16>
    %c0_5 = arith.constant 0 : index
    %c0_6 = arith.constant 0 : index
    %5 = vector.load %arg4[%c0_5, %c0_6] : memref<1x128xf32, #tpu.memory_space<vmem>>, vector<1x128xf32>
    %cst = arith.constant dense<0.000000e+00> : vector<8x128xf32>
    %6 = tpu.matmul %1, %4, %cst {dimension_numbers = #tpu.dot_dimension_numbers<[1], [0], [0], [1], [0, 0, 1, 1], [], []>} : vector<8x32xbf16>, vector<32x128xbf16>, vector<8x128xf32> -> vector<8x128xf32>
    %7 = vector.broadcast %5 : vector<1x128xf32> to vector<8x128xf32>
    %8 = arith.addf %6, %7 : vector<8x128xf32>
    %cst_7 = arith.constant 0.000000e+00 : f32
    %9 = vector.broadcast %cst_7 : f32 to vector<8x128xf32>
    %10 = arith.maximumf %8, %9 : vector<8x128xf32>
    %cst_8 = arith.constant dense<0.000000e+00> : vector<8x128xf32>
    %11 = tpu.matmul %3, %4, %cst_8 {dimension_numbers = #tpu.dot_dimension_numbers<[1], [0], [0], [1], [0, 0, 1, 1], [], []>} : vector<8x32xbf16>, vector<32x128xbf16>, vector<8x128xf32> -> vector<8x128xf32>
    %12 = vector.broadcast %5 : vector<1x128xf32> to vector<8x128xf32>
    %13 = arith.addf %11, %12 : vector<8x128xf32>
    %cst_9 = arith.constant 0.000000e+00 : f32
    %14 = vector.broadcast %cst_9 : f32 to vector<8x128xf32>
    %15 = arith.maximumf %13, %14 : vector<8x128xf32>
    %16 = arith.mulf %10, %15 : vector<8x128xf32>
    %cst_10 = arith.constant dense<0.000000e+00> : vector<8xf32>
    %17 = vector.multi_reduction <add>, %16, %cst_10 [1] : vector<8x128xf32> to vector<8xf32>
    %18 = vector.shape_cast %17 : vector<8xf32> to vector<8x1xf32>
    %19 = arith.mulf %10, %10 : vector<8x128xf32>
    %cst_11 = arith.constant dense<0.000000e+00> : vector<8xf32>
    %20 = vector.multi_reduction <add>, %19, %cst_11 [1] : vector<8x128xf32> to vector<8xf32>
    %21 = vector.shape_cast %20 : vector<8xf32> to vector<8x1xf32>
    %22 = arith.mulf %15, %15 : vector<8x128xf32>
    %cst_12 = arith.constant dense<0.000000e+00> : vector<8xf32>
    %23 = vector.multi_reduction <add>, %22, %cst_12 [1] : vector<8x128xf32> to vector<8xf32>
    %24 = vector.shape_cast %23 : vector<8xf32> to vector<8x1xf32>
    %cst_13 = arith.constant 1.000000e-16 : f32
    %25 = vector.broadcast %cst_13 : f32 to vector<8x1xf32>
    %26 = arith.maximumf %21, %25 : vector<8x1xf32>
    %27 = math.rsqrt %26 : vector<8x1xf32>
    %cst_14 = arith.constant 1.000000e-16 : f32
    %28 = vector.broadcast %cst_14 : f32 to vector<8x1xf32>
    %29 = arith.maximumf %24, %28 : vector<8x1xf32>
    %30 = math.rsqrt %29 : vector<8x1xf32>
    %31 = arith.mulf %27, %30 : vector<8x1xf32>
    %32 = arith.mulf %18, %31 : vector<8x1xf32>
    %33 = tpu.transpose %32, [1, 0] : vector<8x1xf32> -> vector<1x8xf32>
    %c0_15 = arith.constant 0 : index
    %c0_16 = arith.constant 0 : index
    %34 = vector.load %arg5[%c0_15, %c0_16] : memref<1x8xf32, #tpu.memory_space<vmem>>, vector<1x8xf32>
    tpu.vector_store %arg5[%c0_15, %c0_16], %33 {strides = array<i32>} : memref<1x8xf32, #tpu.memory_space<vmem>>, vector<1x8xf32>,
    return
  }
  func.func @transform_0(%arg0: i32) -> (i32, i32) {
    %c0_i32 = arith.constant 0 : i32
    %c0_i32_0 = arith.constant 0 : i32
    return %arg0, %c0_i32 : i32, i32
  }
  func.func @transform_1(%arg0: i32) -> (i32, i32) {
    %c0_i32 = arith.constant 0 : i32
    %c0_i32_0 = arith.constant 0 : i32
    return %arg0, %c0_i32 : i32, i32
  }
  func.func @transform_2(%arg0: i32) -> (i32, i32) {
    %c0_i32 = arith.constant 0 : i32
    %c0_i32_0 = arith.constant 0 : i32
    %c0_i32_1 = arith.constant 0 : i32
    return %c0_i32, %c0_i32_0 : i32, i32
  }
  func.func @transform_3(%arg0: i32) -> (i32, i32) {
    %c0_i32 = arith.constant 0 : i32
    %c0_i32_0 = arith.constant 0 : i32
    %c0_i32_1 = arith.constant 0 : i32
    return %c0_i32, %c0_i32_0 : i32, i32
  }
  func.func @transform_4(%arg0: i32) -> (i32, i32) {
    %c0_i32 = arith.constant 0 : i32
    %c0_i32_0 = arith.constant 0 : i32
    return %arg0, %c0_i32 : i32, i32
  }
}

module attributes {stable_mosaic.version = 11 : i64} {
  func.func @_ppi_kernel(%arg0: i32, %arg1: memref<8x32xf32, #tpu.memory_space<vmem>>, %arg2: memref<8x32xf32, #tpu.memory_space<vmem>>, %arg3: memref<32x128xbf16, #tpu.memory_space<vmem>>, %arg4: memref<1x128xf32, #tpu.memory_space<vmem>>, %arg5: memref<8x1xf32, #tpu.memory_space<vmem>>) attributes {dimension_semantics = [#tpu.dimension_semantics<parallel>], iteration_bounds = array<i64: 1>, scalar_prefetch = 0 : i64, scratch_operands = 0 : i64, tpu.core_type = #tpu.core_type<tc>, window_params = [{transform_indices = @transform_0, window_bounds = array<i64: 8, 32>}, {transform_indices = @transform_1, window_bounds = array<i64: 8, 32>}, {pipeline_mode = #tpu.pipeline_mode<synchronous>, transform_indices = @transform_2, window_bounds = array<i64: 32, 128>}, {pipeline_mode = #tpu.pipeline_mode<synchronous>, transform_indices = @transform_3, window_bounds = array<i64: 1, 128>}, {transform_indices = @transform_4, window_bounds = array<i64: 8, 1>}]} {
    %c0 = arith.constant 0 : index
    %c0_0 = arith.constant 0 : index
    %0 = vector.load %arg1[%c0, %c0_0] : memref<8x32xf32, #tpu.memory_space<vmem>>, vector<8x32xf32>
    %1 = arith.truncf %0 : vector<8x32xf32> to vector<8x32xbf16>
    %c0_1 = arith.constant 0 : index
    %c0_2 = arith.constant 0 : index
    %2 = vector.load %arg2[%c0_1, %c0_2] : memref<8x32xf32, #tpu.memory_space<vmem>>, vector<8x32xf32>
    %3 = arith.truncf %2 : vector<8x32xf32> to vector<8x32xbf16>
    %c0_3 = arith.constant 0 : index
    %c0_4 = arith.constant 0 : index
    %4 = vector.load %arg3[%c0_3, %c0_4] : memref<32x128xbf16, #tpu.memory_space<vmem>>, vector<32x128xbf16>
    %c0_5 = arith.constant 0 : index
    %c0_6 = arith.constant 0 : index
    %5 = vector.load %arg4[%c0_5, %c0_6] : memref<1x128xf32, #tpu.memory_space<vmem>>, vector<1x128xf32>
    %cst = arith.constant dense<0.000000e+00> : vector<8x128xf32>
    %6 = tpu.matmul %1, %4, %cst {dimension_numbers = #tpu.dot_dimension_numbers<[1], [0], [0], [1], [0, 0, 1, 1], [], []>} : vector<8x32xbf16>, vector<32x128xbf16>, vector<8x128xf32> -> vector<8x128xf32>
    %7 = vector.broadcast %5 : vector<1x128xf32> to vector<8x128xf32>
    %8 = arith.addf %6, %7 : vector<8x128xf32>
    %cst_7 = arith.constant 0.000000e+00 : f32
    %9 = vector.broadcast %cst_7 : f32 to vector<8x128xf32>
    %10 = arith.maximumf %8, %9 : vector<8x128xf32>
    %cst_8 = arith.constant dense<0.000000e+00> : vector<8x128xf32>
    %11 = tpu.matmul %3, %4, %cst_8 {dimension_numbers = #tpu.dot_dimension_numbers<[1], [0], [0], [1], [0, 0, 1, 1], [], []>} : vector<8x32xbf16>, vector<32x128xbf16>, vector<8x128xf32> -> vector<8x128xf32>
    %12 = vector.broadcast %5 : vector<1x128xf32> to vector<8x128xf32>
    %13 = arith.addf %11, %12 : vector<8x128xf32>
    %cst_9 = arith.constant 0.000000e+00 : f32
    %14 = vector.broadcast %cst_9 : f32 to vector<8x128xf32>
    %15 = arith.maximumf %13, %14 : vector<8x128xf32>
    %16 = arith.mulf %10, %15 : vector<8x128xf32>
    %cst_10 = arith.constant dense<0.000000e+00> : vector<8xf32>
    %17 = vector.multi_reduction <add>, %16, %cst_10 [1] : vector<8x128xf32> to vector<8xf32>
    %18 = vector.shape_cast %17 : vector<8xf32> to vector<8x1xf32>
    %19 = arith.mulf %10, %10 : vector<8x128xf32>
    %cst_11 = arith.constant dense<0.000000e+00> : vector<8xf32>
    %20 = vector.multi_reduction <add>, %19, %cst_11 [1] : vector<8x128xf32> to vector<8xf32>
    %21 = vector.shape_cast %20 : vector<8xf32> to vector<8x1xf32>
    %22 = arith.mulf %15, %15 : vector<8x128xf32>
    %cst_12 = arith.constant dense<0.000000e+00> : vector<8xf32>
    %23 = vector.multi_reduction <add>, %22, %cst_12 [1] : vector<8x128xf32> to vector<8xf32>
    %24 = vector.shape_cast %23 : vector<8xf32> to vector<8x1xf32>
    %cst_13 = arith.constant 1.000000e-16 : f32
    %25 = vector.broadcast %cst_13 : f32 to vector<8x1xf32>
    %26 = arith.maximumf %21, %25 : vector<8x1xf32>
    %27 = math.rsqrt %26 : vector<8x1xf32>
    %cst_14 = arith.constant 1.000000e-16 : f32
    %28 = vector.broadcast %cst_14 : f32 to vector<8x1xf32>
    %29 = arith.maximumf %24, %28 : vector<8x1xf32>
    %30 = math.rsqrt %29 : vector<8x1xf32>
    %31 = arith.mulf %27, %30 : vector<8x1xf32>
    %32 = arith.mulf %18, %31 : vector<8x1xf32>
    %c0_15 = arith.constant 0 : index
    %c0_16 = arith.constant 0 : index
    %33 = vector.load %arg5[%c0_15, %c0_16] : memref<8x1xf32, #tpu.memory_space<vmem>>, vector<8x1xf32>
    tpu.vector_store %arg5[%c0_15, %c0_16], %32 {strides = array<i32>} : memref<8x1xf32, #tpu.memory_space<vmem>>, vector<8x1xf32>,
    return
  }
  func.func @transform_0(%arg0: i32) -> (i32, i32) {
    %c0_i32 = arith.constant 0 : i32
    %c0_i32_0 = arith.constant 0 : i32
    return %arg0, %c0_i32 : i32, i32
  }
  func.func @transform_1(%arg0: i32) -> (i32, i32) {
    %c0_i32 = arith.constant 0 : i32
    %c0_i32_0 = arith.constant 0 : i32
    return %arg0, %c0_i32 : i32, i32
  }
  func.func @transform_2(%arg0: i32) -> (i32, i32) {
    %c0_i32 = arith.constant 0 : i32
    %c0_i32_0 = arith.constant 0 : i32
    %c0_i32_1 = arith.constant 0 : i32
    return %c0_i32, %c0_i32_0 : i32, i32
  }
  func.func @transform_3(%arg0: i32) -> (i32, i32) {
    %c0_i32 = arith.constant 0 : i32
    %c0_i32_0 = arith.constant 0 : i32
    %c0_i32_1 = arith.constant 0 : i32
    return %c0_i32, %c0_i32_0 : i32, i32
  }
  func.func @transform_4(%arg0: i32) -> (i32, i32) {
    %c0_i32 = arith.constant 0 : i32
    %c0_i32_0 = arith.constant 0 : i32
    return %arg0, %c0_i32 : i32, i32
  }
}

</mosaic_0001>

<bundles_post_ra>
// kernel: _ppi_forward.1
= control target key start
LH: loop header
LB: loop body
LE: loop exit
PB: predicated region body
PF: predicated region fallthrough
CT: control target
= control target key end

     0   :  { %v256_v1 = vmov 0.0   ;;  %s302_s0 = inlined_call_operand.vmem [shape: f32[8,32], index: 0, kind: input, shape index: {}]   ;;  %s303_s1 = inlined_call_operand.vmem [shape: f32[8,32], index: 1, kind: input, shape index: {}]   ;;  %s304_s2 = inlined_call_operand.vmem [shape: bf16[32,128], index: 2, kind: input, shape index: {}]   ;;  %s305_s3 = inlined_call_operand.vmem [shape: f32[1,128], index: 3, kind: input, shape index: {}]   ;;  %s306_s4 = inlined_call_operand.hbm [shape: f32[1,8], index: 4, kind: output, shape index: {}]  }
   0x1   :  { %v228_v0 = vld [vmem:[%s304_s2 + $0x8] sm:$0xff]   ;;  %209 = vmatprep.subr.bf16.mxu0 %v256_v1  ;;  %217 = vmatprep.subr.bf16.mxu1 %v256_v1  ;;  %v229_v2 = vld [vmem:[%s304_s2] sm:$0xff]  }
   0x2   :  { %210 = vmatpush3.bf16.msra.mxu0 %v228_v0  ;;  %218 = vmatpush3.bf16.msra.mxu1 %v228_v0  ;;  %v19_v3 = vld [vmem:[%s302_s0] sm:$0xff] }
   0x3   :  { %v21_v4 = vld [vmem:[%s303_s1] sm:$0xff]  ;;  %211 = vmatprep.subr.bf16.mxu0 %v256_v1  ;;  %219 = vmatprep.subr.bf16.mxu1 %v256_v1 }
   0x4   :  { %9 = vsyncpa [#allocation3], 0  ;;  %vm257_vm0 = vmmov 0   ;;  %v20_v5 = vpack.c.bf16 %v19_v3, %v19_v3  ;;  %v22_v6 = vpack.c.bf16 %v21_v4, %v21_v4  ;;  %vm46_vm1 = vcmask 261120   ;;  %v198_v7 = vld [vmem:[%s305_s3] ss:$0 sm:$0xff] }
   0x5   :  { %213 = vmatprep.mubr.msk.bf16.mxu0 %vm257_vm0, %v256_v1  ;;  %221 = vmatprep.mubr.msk.bf16.mxu1 %vm257_vm0, %v256_v1  ;;  %s258_s0 = smov [#allocation2]   ;;  %vm182_vm2 = vcmask 57344  }
   0x6   :  { %212 = vmatpush3.bf16.msra.mxu0 %v229_v2  ;;  %220 = vmatpush3.bf16.msra.mxu1 %v229_v2  ;;  %s190_s1 = sshll.u32 %s258_s0, 4  ;;  %s191_s1 = int_to_ptr.vmem [resolvable:$true] %s190_s1 }
   0x7   :  { %s234_s3 = scalar_lea.vmem %s191_s1, 16  ;;  %s238_s24 = scalar_lea.vmem %s191_s1, 32 }
   0x8   :  { %p235_p0 = scmp.ne.s32.totalorder %s191_s1, %s234_s3  ;;  %p239_p1 = scmp.lt.s32.totalorder %s191_s1, %s191_s1 }
   0x9   :  { %214 = vmatmul.mubr.msk.bf16.vlgmr.msra.gmra.mxu0 %vm46_vm1, %v20_v5  ;;  %222 = vmatmul.mubr.msk.bf16.vlgmr.msra.gmra.mxu1 %vm46_vm1, %v22_v6  ;;  %p240_p2 = scmp.lt.s32.totalorder %s238_s24, %s234_s3 }
   0xb   :  { %p241_p3 = por %p240_p2, %p239_p1 }
   0xd   :  { %p242_p4 = pnand %p241_p3, %p235_p0 }
  0xc9   :  { %v84_v8 = vpop.f32.mrf.mxu0  ;;  %v128_v9 = vpop.f32.mrf.mxu1 }
  0xca   :  { %v85_v10 = vadd.f32 %v198_v7, %v84_v8  ;;  %v129_v11 = vadd.f32 %v198_v7, %v128_v9 }
  0xcb   :  { %v215_v12 = vpop.f32.mrf.mxu0  ;;  %v223_v13 = vpop.f32.mrf.mxu1 }
  0xcc   :  { %v90_v14 = vmax.f32 %v85_v10, 0.0  ;;  %v134_v15 = vmax.f32 %v129_v11, 0.0 }
  0xcd   :  { %v87_v16 = vpop.f32.mrf.mxu0  ;;  %v131_v17 = vpop.f32.mrf.mxu1 }
  0xce   :  { %v138_v18 = vmul.f32 %v90_v14, %v90_v14  ;;  %v135_v19 = vmul.f32 %v134_v15, %v90_v14  ;;  %v141_v22 = vmul.f32 %v134_v15, %v134_v15 }
  0xcf   :  { %v216_v20 = vpop.f32.mrf.mxu0  ;;  %v224_v21 = vpop.f32.mrf.mxu1 }
  0xd0   :  { %139 = vadd.xlane.f32.xlu0 %v138_v18  ;;  %136 = vadd.xlane.f32.xlu1 %v135_v19 }
  0xd4   :  { %142 = vadd.xlane.f32.xlu0 %v141_v22 }
 0x159   :  { %v140_v23 = vpop.xlane.xlu0 %139  ;;  %v137_v30 = vpop.xlane.xlu1 %136 }
 0x15a   :  { %v144_v24 = vmax.f32 %v140_v23, 1e-16 }
 0x15c   :  { %230 = vrsqrt.f32 %v144_v24 }
 0x15d   :  { %v143_v25 = vpop.xlane.xlu0 %142 }
 0x15e   :  { %v146_v26 = vmax.f32 %v143_v25, 1e-16 }
 0x160   :  { %232 = vrsqrt.f32 %v146_v26 }
 0x169   :  { %v231_v27 = vpop.eup %230 }
 0x16d   :  { %v233_v28 = vpop.eup %232 }
 0x16e   :  { %v148_v29 = vmul.f32 %v233_v28, %v231_v27 }
 0x170   :  { %v149_v31 = vmul.f32 %v148_v29, %v137_v30 }
 0x172   :  { %150 = vxpose.xlu1.b32.start.end [1/1] (short) (narrow) %v149_v31, 8 }
 0x1ee   :  { %v166_v32 = vpop.trf.xlu1 }
 0x1ef   :  { %183 = vst.msk [vmem:[#allocation2] sm:$0x1] %vm182_vm2, %v166_v32 }
 0x1f0   :  { %245 = shalt.err (!%p242_p4)
}
 0x1f1   :  { %193 = dma.vmem_to_hbm [thread:$0]  %s191_s1, 16, %s306_s4, [#allocation3]  }
 0x1f2   :  { %254 = dma.done.wait [#allocation3], 16  }
 0x1f3   :  { %255 = vsyncadd [#allocation3], 4294967280 }
 0x1f4   :  { %197 = vsyncpa [#allocation3], 1 }

// kernel: _ppi_forward.1
= control target key start
LH: loop header
LB: loop body
LE: loop exit
PB: predicated region body
PF: predicated region fallthrough
CT: control target
= control target key end

     0   :  { %v190_v0 = vmov 0.0   ;;  %vm191_vm0 = vmmov 0   ;;  %vm45_vm1 = vcmask 261120   ;;  %vm149_vm2 = vcmask 7168   ;;  %s235_s2 = inlined_call_operand.vmem [shape: bf16[32,128], index: 2, kind: input, shape index: {}]   ;;  %s236_s0 = inlined_call_operand.vmem [shape: f32[8,32], index: 0, kind: input, shape index: {}]   ;;  %s237_s1 = inlined_call_operand.vmem [shape: f32[8,32], index: 1, kind: input, shape index: {}]   ;;  %s238_s3 = inlined_call_operand.vmem [shape: f32[1,128], index: 3, kind: input, shape index: {}]   ;;  %s239_s4 = inlined_call_operand.vmem [shape: f32[8,1], index: 4, kind: output, shape index: {}]  }
   0x1   :  { %166 = vmatprep.subr.bf16.mxu0 %v190_v0  ;;  %174 = vmatprep.subr.bf16.mxu1 %v190_v0  ;;  %v184_v1 = vld [vmem:[%s235_s2 + $0x8] sm:$0xff]   ;;  %v185_v2 = vld [vmem:[%s235_s2] sm:$0xff]  }
   0x2   :  { %170 = vmatprep.mubr.msk.bf16.mxu0 %vm191_vm0, %v190_v0  ;;  %178 = vmatprep.mubr.msk.bf16.mxu1 %vm191_vm0, %v190_v0  ;;  %v18_v3 = vld [vmem:[%s236_s0] sm:$0xff] }
   0x3   :  { %167 = vmatpush3.bf16.msra.mxu0 %v184_v1  ;;  %175 = vmatpush3.bf16.msra.mxu1 %v184_v1  ;;  %v20_v4 = vld [vmem:[%s237_s1] sm:$0xff]  ;;  %v19_v5 = vpack.c.bf16 %v18_v3, %v18_v3 }
   0x4   :  { %168 = vmatprep.subr.bf16.mxu0 %v190_v0  ;;  %176 = vmatprep.subr.bf16.mxu1 %v190_v0  ;;  %v21_v6 = vpack.c.bf16 %v20_v4, %v20_v4  ;;  %v155_v7 = vld [vmem:[%s238_s3] ss:$0 sm:$0xff] }
   0x7   :  { %169 = vmatpush3.bf16.msra.mxu0 %v185_v2  ;;  %177 = vmatpush3.bf16.msra.mxu1 %v185_v2 }
   0xa   :  { %171 = vmatmul.mubr.msk.bf16.vlgmr.msra.gmra.mxu0 %vm45_vm1, %v19_v5  ;;  %179 = vmatmul.mubr.msk.bf16.vlgmr.msra.gmra.mxu1 %vm45_vm1, %v21_v6 }
  0xca   :  { %v83_v8 = vpop.f32.mrf.mxu0  ;;  %v127_v9 = vpop.f32.mrf.mxu1 }
  0xcb   :  { %v84_v10 = vadd.f32 %v155_v7, %v83_v8  ;;  %v128_v11 = vadd.f32 %v155_v7, %v127_v9 }
  0xcc   :  { %v172_v12 = vpop.f32.mrf.mxu0  ;;  %v180_v13 = vpop.f32.mrf.mxu1 }
  0xcd   :  { %v89_v14 = vmax.f32 %v84_v10, 0.0  ;;  %v133_v15 = vmax.f32 %v128_v11, 0.0 }
  0xce   :  { %v86_v16 = vpop.f32.mrf.mxu0  ;;  %v130_v17 = vpop.f32.mrf.mxu1 }
  0xcf   :  { %v137_v18 = vmul.f32 %v89_v14, %v89_v14  ;;  %v134_v19 = vmul.f32 %v133_v15, %v89_v14  ;;  %v140_v22 = vmul.f32 %v133_v15, %v133_v15 }
  0xd0   :  { %v173_v20 = vpop.f32.mrf.mxu0  ;;  %v181_v21 = vpop.f32.mrf.mxu1 }
  0xd1   :  { %138 = vadd.xlane.f32.xlu0 %v137_v18  ;;  %135 = vadd.xlane.f32.xlu1 %v134_v19 }
  0xd5   :  { %141 = vadd.xlane.f32.xlu0 %v140_v22 }
 0x15a   :  { %v139_v23 = vpop.xlane.xlu0 %138  ;;  %v136_v30 = vpop.xlane.xlu1 %135 }
 0x15b   :  { %v143_v24 = vmax.f32 %v139_v23, 1e-16 }
 0x15d   :  { %186 = vrsqrt.f32 %v143_v24 }
 0x15e   :  { %v142_v25 = vpop.xlane.xlu0 %141 }
 0x15f   :  { %v145_v26 = vmax.f32 %v142_v25, 1e-16 }
 0x161   :  { %188 = vrsqrt.f32 %v145_v26 }
 0x16a   :  { %v187_v27 = vpop.eup %186 }
 0x16e   :  { %v189_v28 = vpop.eup %188 }
 0x16f   :  { %v147_v29 = vmul.f32 %v189_v28, %v187_v27 }
 0x171   :  { %v148_v31 = vmul.f32 %v147_v29, %v136_v30 }
 0x173   :  { %150 = vst.msk [vmem:[%s239_s4] sm:$0xff] %vm149_vm2, %v148_v31 }

</bundles_post_ra>
